<compile_context>
chip_gen: v7x
topology: tpu7x:2x2x1
jax: 0.10.0
libtpu: 0.0.40
codegen_flags: <defaults>
</compile_context>

<pallas_src>
import functools

import jax
import jax.numpy as jnp
from jax.experimental import pallas as pl
from jax.experimental.pallas import tpu as pltpu


def _round_up(a, b):
    return ((a + b - 1) // b) * b


def _label_smoothing_kernel(pred_ref, tgt_ref, out_ref, *,
                            confidence, smooth_val, classes,
                            n_valid, block_rows, row_masked, is_prob):
    x = pred_ref[...].astype(jnp.float32)                  # (tn, C)
    tgt = tgt_ref[...]                                     # (tn, 1) int32

    # (1, C) iota broadcast against (tn, 1) target -> (tn, C) mask.
    col = jax.lax.broadcasted_iota(jnp.int32, (1, x.shape[1]), 1)
    tgt_mask = col == tgt

    if is_prob:
        # logp = log(pred); row sums are over the logical C classes only.
        lp = jnp.log(x)
        logp_tgt = jnp.sum(jnp.where(tgt_mask, lp, 0.0), axis=-1, keepdims=True)
        sum_logp = jnp.sum(lp, axis=-1, keepdims=True)
    else:
        # log_softmax without materializing the full logp tile:
        #   logp[c] = x[c] - lse ;  sum_c logp = sum_x - C*lse
        m = jnp.max(x, axis=-1, keepdims=True)
        lse = jnp.log(jnp.sum(jnp.exp(x - m), axis=-1, keepdims=True)) + m
        x_tgt = jnp.sum(jnp.where(tgt_mask, x, 0.0), axis=-1, keepdims=True)
        sum_x = jnp.sum(x, axis=-1, keepdims=True)
        logp_tgt = x_tgt - lse
        sum_logp = sum_x - jnp.float32(classes) * lse

    # -sum(true_dist * logp) = -((conf - sv)*logp_tgt + sv*sum_logp)
    per_row = -(jnp.float32(confidence - smooth_val) * logp_tgt
                + jnp.float32(smooth_val) * sum_logp)       # (tn, 1)

    if row_masked:
        # Edge block: rows beyond the real batch hold garbage (possibly NaN);
        # zero them (writeback is clipped anyway, this is cheap defense).
        row = (jax.lax.broadcasted_iota(jnp.int32, per_row.shape, 0)
               + pl.program_id(0) * block_rows)
        per_row = jnp.where(row < n_valid, per_row, 0.0)

    out_ref[...] = per_row


def label_smoothing_loss(pred, target, *, classes, smoothing=0.0,
                         reduction='mean', is_prob=False,
                         block_rows=None, max_block_bytes=8 << 20):
    """pred: (N, C) float, target: (N,) int. Returns scalar (mean) or (N,)."""
    n, c = pred.shape
    assert c == classes

    confidence = 1.0 - smoothing
    smooth_val = smoothing / (classes - 1) if classes > 1 else 0.0

    itemsize = jnp.dtype(pred.dtype).itemsize
    # Sublane alignment per dtype: 8 (f32) / 16 (bf16) / 32 (int8, fp8).
    row_align = max(8, 32 // max(1, itemsize))
    # Per-row VMEM footprint of one pipeline slot: pred tile row (lane-padded
    # to 128) + the lane-padded (rows, 1) int32 target and f32 output rows.
    c_pad = _round_up(c, 128)
    row_bytes = c_pad * itemsize + 2 * 128 * 4

    if block_rows is None:
        rows = max_block_bytes // row_bytes
        rows = min(rows, 8192)
    else:
        rows = int(block_rows)
    if rows >= n:
        rows = n                            # one block, full batch dim (legal)
    else:
        rows = max(row_align, (rows // row_align) * row_align)
    block_rows = rows
    num_blocks = pl.cdiv(n, block_rows)

    tgt2d = target.astype(jnp.int32).reshape(n, 1)

    # Double-buffered tiles + headroom; clamp so it fits every generation
    # (v5e 16 MiB scoped default / 128 MiB physical, v7x 64 MiB physical).
    vmem_need = 2 * block_rows * row_bytes + (2 << 20)
    vmem_limit = int(min(max(vmem_need, 32 << 20), 48 << 20))

    kernel = functools.partial(
        _label_smoothing_kernel,
        confidence=float(confidence), smooth_val=float(smooth_val),
        classes=classes, n_valid=n, block_rows=block_rows,
        row_masked=(n % block_rows != 0), is_prob=bool(is_prob))

    per_row = pl.pallas_call(
        kernel,
        out_shape=jax.ShapeDtypeStruct((n, 1), jnp.float32),
        grid_spec=pltpu.PrefetchScalarGridSpec(
            num_scalar_prefetch=0,
            grid=(num_blocks,),
            in_specs=[
                # Class axis = full array dim (no HBM padding; Mosaic masks
                # the lane padding in the row reductions).
                pl.BlockSpec((block_rows, c), lambda i: (i, 0)),
                pl.BlockSpec((block_rows, 1), lambda i: (i, 0)),
            ],
            out_specs=pl.BlockSpec((block_rows, 1), lambda i: (i, 0)),
        ),
        compiler_params=pltpu.CompilerParams(
            dimension_semantics=("parallel",),   # no accumulator -> megacore OK
            vmem_limit_bytes=vmem_limit),
    )(pred, tgt2d)

    if reduction == 'mean':
        return jnp.sum(per_row) / jnp.float32(n)
    return per_row[:, 0]


def _reference(pred, target, classes, smoothing, reduction='mean',
               is_prob=False):
    pred = pred.astype(jnp.float32)
    if is_prob:
        logp = jnp.log(pred)
    else:
        logp = jax.nn.log_softmax(pred, axis=-1)
    confidence = 1.0 - smoothing
    true_dist = jnp.full_like(logp, smoothing / (classes - 1))
    true_dist = true_dist.at[jnp.arange(pred.shape[0]), target].set(confidence)
    per_row = jnp.sum(-true_dist * logp, axis=-1)
    if reduction == 'mean':
        return jnp.mean(per_row)
    return per_row


if __name__ == "__main__":
    key = jax.random.PRNGKey(0)
    k1, k2, k3, k4, k5, k6 = jax.random.split(key, 6)
    smoothing = 0.1

    # Case 1: aligned shapes (batch=16, classes=128).
    N, C = 16, 128
    pred = jax.random.normal(k1, (N, C), dtype=jnp.float32)
    target = jax.random.randint(k2, (N,), 0, C, dtype=jnp.int32)
    loss = jax.block_until_ready(
        label_smoothing_loss(pred, target, classes=C, smoothing=smoothing))
    ref = _reference(pred, target, C, smoothing)
    assert jnp.allclose(loss, ref, atol=1e-4, rtol=1e-4), (loss, ref)

    # Case 2: unaligned classes (batch=12, classes=1000) -> full-dim class
    # block, no HBM padding; validates Mosaic lane-pad masking of reductions.
    N2, C2 = 12, 1000
    pred2 = jax.random.normal(k3, (N2, C2), dtype=jnp.float32)
    target2 = jax.random.randint(k4, (N2,), 0, C2, dtype=jnp.int32)
    loss2 = jax.block_until_ready(
        label_smoothing_loss(pred2, target2, classes=C2, smoothing=smoothing))
    ref2 = _reference(pred2, target2, C2, smoothing)
    assert jnp.allclose(loss2, ref2, atol=1e-4, rtol=1e-4), (loss2, ref2)

    # Case 3: is_prob=True path (pred already a probability distribution).
    probs = jax.nn.softmax(pred, axis=-1)
    loss3 = jax.block_until_ready(
        label_smoothing_loss(probs, target, classes=C, smoothing=smoothing,
                             is_prob=True))
    ref3 = _reference(probs, target, C, smoothing, is_prob=True)
    assert jnp.allclose(loss3, ref3, atol=1e-4, rtol=1e-4), (loss3, ref3)

    # Case 4: reduction='none' per-row losses.
    loss4 = jax.block_until_ready(
        label_smoothing_loss(pred, target, classes=C, smoothing=smoothing,
                             reduction='none'))
    ref4 = _reference(pred, target, C, smoothing, reduction='none')
    assert jnp.allclose(loss4, ref4, atol=1e-4, rtol=1e-4), (loss4, ref4)

    # Case 5: forced small block_rows with a partial edge block
    # (N=20, block_rows=8 -> grid=3, last block clipped + row-masked).
    N5, C5 = 20, 1000
    pred5 = jax.random.normal(k5, (N5, C5), dtype=jnp.float32)
    target5 = jax.random.randint(k6, (N5,), 0, C5, dtype=jnp.int32)
    loss5 = jax.block_until_ready(
        label_smoothing_loss(pred5, target5, classes=C5, smoothing=smoothing,
                             block_rows=8))
    ref5 = _reference(pred5, target5, C5, smoothing)
    assert jnp.allclose(loss5, ref5, atol=1e-4, rtol=1e-4), (loss5, ref5)

    # Case 6: bf16 logits (dtype-aware row alignment, in-register f32 upcast).
    pred6 = pred2.astype(jnp.bfloat16)
    loss6 = jax.block_until_ready(
        label_smoothing_loss(pred6, target2, classes=C2, smoothing=smoothing))
    ref6 = _reference(pred6, target2, C2, smoothing)
    assert jnp.allclose(loss6, ref6, atol=1e-3, rtol=1e-3), (loss6, ref6)

    print("KERNEL_OK")
</pallas_src>

<mosaic_0001>
module attributes {stable_mosaic.version = 11 : i64} {
  func.func @_label_smoothing_kernel(%arg0: i32, %arg1: memref<16x128xf32, #tpu.memory_space<vmem>>, %arg2: memref<16x1xi32, #tpu.memory_space<vmem>>, %arg3: memref<16x1xf32, #tpu.memory_space<vmem>>) attributes {dimension_semantics = [#tpu.dimension_semantics<parallel>], iteration_bounds = array<i64: 1>, scalar_prefetch = 0 : i64, scratch_operands = 0 : i64, tpu.core_type = #tpu.core_type<tc>, window_params = [{transform_indices = @transform_0, window_bounds = array<i64: 16, 128>}, {transform_indices = @transform_1, window_bounds = array<i64: 16, 1>}, {transform_indices = @transform_2, window_bounds = array<i64: 16, 1>}]} {
    %c0 = arith.constant 0 : index
    %c0_0 = arith.constant 0 : index
    %0 = vector.load %arg1[%c0, %c0_0] : memref<16x128xf32, #tpu.memory_space<vmem>>, vector<16x128xf32>
    %c0_1 = arith.constant 0 : index
    %c0_2 = arith.constant 0 : index
    %1 = vector.load %arg2[%c0_1, %c0_2] : memref<16x1xi32, #tpu.memory_space<vmem>>, vector<16x1xi32>
    %2 = tpu.iota {dimensions = array<i32: 1>} : vector<1x128xi32>
    %3 = vector.broadcast %2 : vector<1x128xi32> to vector<16x128xi32>
    %4 = vector.broadcast %1 : vector<16x1xi32> to vector<16x128xi32>
    %5 = arith.cmpi eq, %3, %4 : vector<16x128xi32>
    %cst = arith.constant dense<0xFF800000> : vector<16xf32>
    %6 = vector.multi_reduction <maximumf>, %0, %cst [1] : vector<16x128xf32> to vector<16xf32>
    %7 = vector.shape_cast %6 : vector<16xf32> to vector<16x1xf32>
    %8 = vector.broadcast %7 : vector<16x1xf32> to vector<16x128xf32>
    %9 = arith.subf %0, %8 : vector<16x128xf32>
    %10 = math.exp %9 : vector<16x128xf32>
    %cst_3 = arith.constant dense<0.000000e+00> : vector<16xf32>
    %11 = vector.multi_reduction <add>, %10, %cst_3 [1] : vector<16x128xf32> to vector<16xf32>
    %12 = vector.shape_cast %11 : vector<16xf32> to vector<16x1xf32>
    %13 = math.log %12 : vector<16x1xf32>
    %14 = arith.addf %13, %7 : vector<16x1xf32>
    %cst_4 = arith.constant 0.000000e+00 : f32
    %15 = vector.broadcast %cst_4 : f32 to vector<16x128xf32>
    %16 = arith.select %5, %0, %15 : vector<16x128xi1>, vector<16x128xf32>
    %cst_5 = arith.constant dense<0.000000e+00> : vector<16xf32>
    %17 = vector.multi_reduction <add>, %16, %cst_5 [1] : vector<16x128xf32> to vector<16xf32>
    %18 = vector.shape_cast %17 : vector<16xf32> to vector<16x1xf32>
    %cst_6 = arith.constant dense<0.000000e+00> : vector<16xf32>
    %19 = vector.multi_reduction <add>, %0, %cst_6 [1] : vector<16x128xf32> to vector<16xf32>
    %20 = vector.shape_cast %19 : vector<16xf32> to vector<16x1xf32>
    %21 = arith.subf %18, %14 : vector<16x1xf32>
    %cst_7 = arith.constant 1.280000e+02 : f32
    %22 = vector.broadcast %cst_7 : f32 to vector<16x1xf32>
    %23 = arith.mulf %22, %14 : vector<16x1xf32>
    %24 = arith.subf %20, %23 : vector<16x1xf32>
    %cst_8 = arith.constant 0.899212599 : f32
    %25 = vector.broadcast %cst_8 : f32 to vector<16x1xf32>
    %26 = arith.mulf %25, %21 : vector<16x1xf32>
    %cst_9 = arith.constant 7.87401571E-4 : f32
    %27 = vector.broadcast %cst_9 : f32 to vector<16x1xf32>
    %28 = arith.mulf %27, %24 : vector<16x1xf32>
    %29 = arith.addf %26, %28 : vector<16x1xf32>
    %cst_10 = arith.constant 0.000000e+00 : f32
    %30 = vector.broadcast %cst_10 : f32 to vector<16x1xf32>
    %31 = arith.subf %30, %29 : vector<16x1xf32>
    %c0_11 = arith.constant 0 : index
    %c0_12 = arith.constant 0 : index
    %32 = vector.load %arg3[%c0_11, %c0_12] : memref<16x1xf32, #tpu.memory_space<vmem>>, vector<16x1xf32>
    tpu.vector_store %arg3[%c0_11, %c0_12], %31 {strides = array<i32>} : memref<16x1xf32, #tpu.memory_space<vmem>>, vector<16x1xf32>,
    return
  }
  func.func @transform_0(%arg0: i32) -> (i32, i32) {
    %c0_i32 = arith.constant 0 : i32
    %c0_i32_0 = arith.constant 0 : i32
    return %arg0, %c0_i32 : i32, i32
  }
  func.func @transform_1(%arg0: i32) -> (i32, i32) {
    %c0_i32 = arith.constant 0 : i32
    %c0_i32_0 = arith.constant 0 : i32
    return %arg0, %c0_i32 : i32, i32
  }
  func.func @transform_2(%arg0: i32) -> (i32, i32) {
    %c0_i32 = arith.constant 0 : i32
    %c0_i32_0 = arith.constant 0 : i32
    return %arg0, %c0_i32 : i32, i32
  }
}

</mosaic_0001>

<bundles_post_ra>
// kernel: tpu_custom_call.1
= control target key start
LH: loop header
LB: loop body
LE: loop exit
PB: predicated region body
PF: predicated region fallthrough
CT: control target
= control target key end

     0   :  { %v87_v1 = vmov 0   ;;  %v15_v10 = vlaneseq  ;;  %vm69_vm2 = vcmask 7168   ;;  %s121_s0 = inlined_call_operand.vmem [shape: f32[16,128], index: 0, kind: input, shape index: {}]   ;;  %s122_s1 = inlined_call_operand.vmem [shape: s32[16,1], index: 1, kind: input, shape index: {}]   ;;  %s123_s2 = inlined_call_operand.vmem [shape: f32[16,1], index: 2, kind: output, shape index: {}]  }
   0x1   :  { %v11_v0 = vld [vmem:[%s121_s0] sm:$0xff]  ;;  %77 = vset.pattern.permute.xlu1 %v87_v1  ;;  %78 = vset.pattern.permute.xlu0 %v87_v1  ;;  %v12_v3 = vld [vmem:[%s121_s0 + $0x8] sm:$0xff] }
   0x2   :  { %v13_v2 = vld [vmem:[%s122_s1] sm:$0xff]  ;;  %25 = vmax.xlane.f32.xlu0 %v11_v0  ;;  %v14_v4 = vld [vmem:[%s122_s1 + $0x8] sm:$0xff]  ;;  %v16_v13 = vand.u32 127, %v15_v10 }
   0x3   :  { %18 = vperm.xlu1 %77, %v13_v2  }
   0x6   :  { %27 = vmax.xlane.f32.xlu0 %v12_v3 }
   0x7   :  { %21 = vperm.xlu1 %77, %v14_v4  }
  0x82   :  { %v19_v12 = vpop.permute.xlu1 %18 }
  0x83   :  { %vm23_vm0 = vcmp.eq.s32.totalorder %v16_v13, %v19_v12 }
  0x84   :  { %v45_v16 = vsel %vm23_vm0, %v11_v0, 0.0 }
  0x86   :  { %v22_v15 = vpop.permute.xlu1 %21 }
  0x87   :  { %vm24_vm1 = vcmp.eq.s32.totalorder %v16_v13, %v22_v15 }
  0x88   :  { %v46_v18 = vsel %vm24_vm1, %v12_v3, 0.0 }
  0x8f   :  { %v26_v5 = vpop.xlane.xlu0 %25 }
  0x90   :  { %v29_v6 = vsub.f32 %v11_v0, %v26_v5 }
  0x92   :  { %v31_v7 = vmul.f32 1.442695, %v29_v6 }
  0x93   :  { %v28_v8 = vpop.xlane.xlu0 %27 }
  0x94   :  { %79 = vpow2.f32 %v31_v7  ;;  %v30_v9 = vsub.f32 %v12_v3, %v28_v8 }
  0x96   :  { %v33_v11 = vmul.f32 1.442695, %v30_v9 }
  0x98   :  { %81 = vpow2.f32 %v33_v11 }
  0x9e   :  { %v80_v14 = vpop.eup %79 }
  0x9f   :  { %35 = vadd.xlane.f32.xlu0 %v80_v14 }
  0xa2   :  { %v82_v17 = vpop.eup %81 }
  0xa3   :  { %37 = vadd.xlane.f32.xlu1 %v82_v17  ;;  %47 = vadd.xlane.f32.xlu0 %v45_v16 }
  0xa7   :  { %49 = vadd.xlane.f32.xlu0 %v46_v18 }
  0xab   :  { %51 = vadd.xlane.f32.xlu0 %v11_v0 }
  0xaf   :  { %53 = vadd.xlane.f32.xlu0 %v12_v3 }
 0x12c   :  { %v36_v19 = vpop.xlane.xlu0 %35 }
 0x12d   :  { %83 = vlog2.f32 %v36_v19 }
 0x130   :  { %v38_v20 = vpop.xlane.xlu1 %37  ;;  %v48_v21 = vpop.xlane.xlu0 %47 }
 0x131   :  { %85 = vlog2.f32 %v38_v20 }
 0x134   :  { %v50_v22 = vpop.xlane.xlu0 %49 }
 0x137   :  { %v84_v23 = vpop.eup %83 }
 0x138   :  { %v40_v24 = vmul.f32 0.6931472, %v84_v23  ;;  %v52_v25 = vpop.xlane.xlu0 %51 }
 0x13a   :  { %v43_v26 = vadd.f32 %v40_v24, %v26_v5 }
 0x13b   :  { %v86_v27 = vpop.eup %85 }
 0x13c   :  { %v42_v28 = vmul.f32 0.6931472, %v86_v27  ;;  %v55_v29 = vsub.f32 %v48_v21, %v43_v26  ;;  %v57_v30 = vmul.f32 128.0, %v43_v26  ;;  %v54_v33 = vpop.xlane.xlu0 %53 }
 0x13e   :  { %v44_v31 = vadd.f32 %v42_v28, %v28_v8  ;;  %v59_v32 = vsub.f32 %v52_v25, %v57_v30  ;;  %v61_v34 = vmul.f32 0.8992126, %v55_v29 }
 0x140   :  { %v56_v35 = vsub.f32 %v50_v22, %v44_v31  ;;  %v63_v36 = vmul.f32 0.0007874016, %v59_v32  ;;  %v58_v37 = vmul.f32 128.0, %v44_v31 }
 0x142   :  { %v65_v38 = vadd.f32 %v63_v36, %v61_v34  ;;  %v60_v39 = vsub.f32 %v54_v33, %v58_v37  ;;  %v62_v40 = vmul.f32 0.8992126, %v56_v35 }
 0x144   :  { %v67_v41 = vsub.f32 0.0, %v65_v38  ;;  %v64_v42 = vmul.f32 0.0007874016, %v60_v39 }
 0x146   :  { %70 = vst.msk [vmem:[%s123_s2] sm:$0xff] %vm69_vm2, %v67_v41  ;;  %v66_v43 = vadd.f32 %v64_v42, %v62_v40 }
 0x148   :  { %v68_v44 = vsub.f32 0.0, %v66_v43 }
 0x14a   :  { %71 = vst.msk [vmem:[%s123_s2 + $0x8] sm:$0xff] %vm69_vm2, %v68_v44 }

</bundles_post_ra>
